<compile_context>
chip_gen: v5e
topology: v5e:2x2
jax: 0.10.0
libtpu: 0.0.40
codegen_flags: <defaults>
</compile_context>

<pallas_src>
from dataclasses import dataclass

import jax
import jax.numpy as jnp
from jax import lax
from jax.experimental import pallas as pl
from jax.experimental.pallas import tpu as pltpu


@dataclass
class Deficient:
    split: float = 0.05
    eps_radius: float = 0.02
    eps_angle: float = 0.02


# ----------------------------------------------------------------------------
# Pallas kernel: one grid step processes `Lb` MZI layers.  The stacked field
# (2B, F) = [real; imag] lives in the carried output block (constant out
# index_map => VMEM-resident across the whole layer chain).
# ----------------------------------------------------------------------------
def psbs_kernel(xs_ref, m_ref, o_ref):
    """
    xs_ref : (2B, F)     f32   stacked [real; imag] input field
    m_ref  : (Lb, F, 2F) bf16  per-layer packed [Mr'|Mi'] (attenuation folded)
    o_ref  : (2B, F)     f32   carried field / final output
    """
    s = pl.program_id(0)

    # Initialize the carried field from the input on the first step only.
    # (Required together with "arbitrary" semantics on the layer-chunk axis.)
    @pl.when(s == 0)
    def _():
        o_ref[...] = xs_ref[...]

    two_b, f = o_ref.shape
    b = two_b // 2
    n_layers_blk = m_ref.shape[0]          # static (block shape)

    def layer(l, carry):
        # bf16 operands into the MXU, f32 accumulate.
        xs = o_ref[...].astype(m_ref.dtype)                         # (2B, F)
        ys = jnp.dot(xs, m_ref[l], preferred_element_type=jnp.float32)  # (2B, 2F)

        # complex recombination (attenuation already folded into Mr'/Mi'):
        #   zr = xr@Mr' - xi@Mi'   zi = xr@Mi' + xi@Mr'
        zr = ys[:b, :f] - ys[b:, f:]        # (B, F) f32
        zi = ys[:b, f:] + ys[b:, :f]        # (B, F) f32

        # write back via aligned sublane slices (no concatenate / temp).
        o_ref[0:b, :] = zr
        o_ref[b:, :] = zi
        return carry

    # Bounded unroll: full unroll only for short chunks, otherwise keep the
    # kernel body small while preserving LLO scheduling visibility.
    unroll = n_layers_blk if n_layers_blk <= 8 else 8
    lax.fori_loop(0, n_layers_blk, layer, 0, unroll=unroll)


# ----------------------------------------------------------------------------
# Glue: fold attenuation into the layer matrices, pack [Mr'|Mi'] along N,
# cast to bf16, and pad the layer count to a multiple of layers_per_step with
# exact identity layers (cdiv grid, no degenerate 1-layer steps).
# ----------------------------------------------------------------------------
def _choose_layers_per_step(L, F, layers_per_step):
    if layers_per_step is None:
        bytes_per_layer = F * (2 * F) * 2                # bf16 packed weights
        budget = max(1, (8 << 20) // bytes_per_layer)    # ~8 MiB weight block/step
        layers_per_step = min(L, budget, 256)            # v7x: 2x8 MiB dbl-buffer ok
    return max(1, min(int(layers_per_step), L))


def prepare_packed(m, a, layers_per_step=None):
    """m: (L, 2, F, F) f32 [Mr; Mi], a: (L, 2, F) f32 [ar; ai].

    Returns (m_packed (L_pad, F, 2F) bf16, layers_per_step, num_steps)."""
    L, _, F, _ = m.shape
    ar = a[:, 0][:, None, :]                              # (L, 1, F) column scale
    ai = a[:, 1][:, None, :]
    mr = m[:, 0].astype(jnp.float32)
    mi = m[:, 1].astype(jnp.float32)
    # z = (x @ M) * a  ==  x @ (M · diag(a))  -> fold the complex column scale.
    mr_f = mr * ar - mi * ai
    mi_f = mr * ai + mi * ar
    m_packed = jnp.concatenate([mr_f, mi_f], axis=-1).astype(jnp.bfloat16)  # (L,F,2F)

    lps = _choose_layers_per_step(L, F, layers_per_step)
    num_steps = -(-L // lps)                              # cdiv
    L_pad = num_steps * lps
    if L_pad != L:
        # identity pad layers (Mr=I, Mi=0): exact pass-through in bf16.
        eye_packed = jnp.concatenate(
            [jnp.eye(F, dtype=jnp.float32), jnp.zeros((F, F), jnp.float32)],
            axis=-1).astype(jnp.bfloat16)
        pad = jnp.broadcast_to(eye_packed, (L_pad - L, F, 2 * F))
        m_packed = jnp.concatenate([m_packed, pad], axis=0)
    return m_packed, lps, num_steps


def forward_psbs_pallas(xs, m, a, *, layers_per_step=None):
    """xs: (2B, F) stacked [real; imag] field, m: (L, 2, F, F), a: (L, 2, F)."""
    two_b, F = xs.shape
    m_packed, lps, num_steps = prepare_packed(m, a, layers_per_step)
    L_pad = m_packed.shape[0]

    flops = 2 * two_b * F * (2 * F) * L_pad               # 1 packed matmul/layer
    bytes_accessed = 2 * m_packed.size + 4 * xs.size + 4 * xs.size

    grid_spec = pltpu.PrefetchScalarGridSpec(
        num_scalar_prefetch=0,
        grid=(num_steps,),
        in_specs=[
            pl.BlockSpec((two_b, F), lambda s: (0, 0)),                  # field
            pl.BlockSpec((lps, F, 2 * F), lambda s: (s, 0, 0)),          # weights
        ],
        out_specs=pl.BlockSpec((two_b, F), lambda s: (0, 0)),            # carry
    )

    return pl.pallas_call(
        psbs_kernel,
        out_shape=jax.ShapeDtypeStruct((two_b, F), jnp.float32),
        grid_spec=grid_spec,
        compiler_params=pltpu.CompilerParams(
            # The layer-chunk axis is a sequential carry — MUST stay "arbitrary".
            dimension_semantics=("arbitrary",),
            # Above the 16/32 MiB scoped defaults (v5e/v6e), below v7x's 64 MiB.
            vmem_limit_bytes=48 << 20),
        cost_estimate=pl.CostEstimate(
            flops=flops, transcendentals=0, bytes_accessed=bytes_accessed),
    )(xs, m_packed)


# ----------------------------------------------------------------------------
# Plain-JAX glue: build per-layer complex transfer matrices (row-vector x @ M
# convention).  Standard PS+BS 2x2 MZI block with split error:
#   u = x_i * e^{i theta}; v = x_j
#   x_i' = t*u + i*r*v ;  x_j' = i*r*u + t*v   with t=cos(pi/4+s), r=sin(pi/4+s)
# ----------------------------------------------------------------------------
def build_layer_matrices(params, index, split, nFeatures):
    nLayers, nAngles, _ = index.shape
    theta = params[0].astype(jnp.float32)              # (L, A)
    s = split.astype(jnp.float32)                      # (L, A)
    t = jnp.cos(jnp.pi / 4.0 + s)
    r = jnp.sin(jnp.pi / 4.0 + s)
    c, sn = jnp.cos(theta), jnp.sin(theta)

    i_idx = index[..., 0]
    j_idx = index[..., 1]
    l_idx = jnp.broadcast_to(jnp.arange(nLayers)[:, None], (nLayers, nAngles))

    eye = jnp.eye(nFeatures, dtype=jnp.float32)
    Tr = jnp.broadcast_to(eye, (nLayers, nFeatures, nFeatures))
    Ti = jnp.zeros((nLayers, nFeatures, nFeatures), jnp.float32)

    # T[out, in] entries of the 2x2 MZI block
    Tr = Tr.at[l_idx, i_idx, i_idx].set(t * c)          # t*e^{i th}   (real)
    Ti = Ti.at[l_idx, i_idx, i_idx].set(t * sn)         # t*e^{i th}   (imag)
    Tr = Tr.at[l_idx, i_idx, j_idx].set(0.0)            # i*r          (real)
    Ti = Ti.at[l_idx, i_idx, j_idx].set(r)              # i*r          (imag)
    Tr = Tr.at[l_idx, j_idx, i_idx].set(-r * sn)        # i*r*e^{i th} (real)
    Ti = Ti.at[l_idx, j_idx, i_idx].set(r * c)          # i*r*e^{i th} (imag)
    Tr = Tr.at[l_idx, j_idx, j_idx].set(t)              # t            (real)
    Ti = Ti.at[l_idx, j_idx, j_idx].set(0.0)            # t            (imag)

    # row-vector convention: x_new = x @ M with M = T^T
    Mr = jnp.swapaxes(Tr, -1, -2)
    Mi = jnp.swapaxes(Ti, -1, -2)
    return jnp.stack([Mr, Mi], axis=1)                  # (L, 2, F, F)


def forward_psbs_ref(xr, xi, m, a):
    """Pure-JAX f32 Precision.HIGHEST reference (sequential complex matmuls)."""
    hi = jax.lax.Precision.HIGHEST
    for l in range(m.shape[0]):
        mr, mi = m[l, 0], m[l, 1]
        yr = jnp.matmul(xr, mr, precision=hi) - jnp.matmul(xi, mi, precision=hi)
        yi = jnp.matmul(xr, mi, precision=hi) + jnp.matmul(xi, mr, precision=hi)
        ar, ai = a[l, 0], a[l, 1]
        xr = yr * ar - yi * ai
        xi = yr * ai + yi * ar
    return xr, xi


def forward_psbs_matched_ref(xs, m_packed, b):
    """Numerics-matched reference: same folded/padded bf16 weights, bf16
    activations into the dot, f32 accumulation and recombination."""
    x = xs.astype(jnp.float32)
    F = xs.shape[1]
    for l in range(m_packed.shape[0]):
        xb = x.astype(jnp.bfloat16)
        ys = jnp.dot(xb, m_packed[l], preferred_element_type=jnp.float32)
        zr = ys[:b, :F] - ys[b:, F:]
        zi = ys[:b, F:] + ys[b:, :F]
        x = jnp.concatenate([zr, zi], axis=0)
    return x


if __name__ == "__main__":
    # Small, MXU/vreg-friendly shapes implied by the module.
    batch, nFeatures, nLayers = 8, 128, 4
    nAngles = nFeatures // 2
    deficient = Deficient(split=0.05, eps_radius=0.02, eps_angle=0.02)

    root = jax.random.PRNGKey(0)
    k_in_r, k_in_i, k_par, k_spl, k_rad, k_phi, k_perm = jax.random.split(root, 7)

    # --- module "buffers"/parameters (deterministic, synthetic) --------------
    params = jax.random.normal(k_par, (1, nLayers, nAngles), jnp.float32)
    split = jax.random.normal(k_spl, (nLayers, nAngles), jnp.float32) * deficient.split
    perms = jnp.stack([jax.random.permutation(jax.random.fold_in(k_perm, l), nFeatures)
                       for l in range(nLayers)])
    index = perms.reshape(nLayers, nAngles, 2).astype(jnp.int32)
    radius = 1.0 - deficient.eps_radius * jax.random.uniform(k_rad, (nLayers, nFeatures))
    phi = deficient.eps_angle * (2.0 * jax.random.uniform(k_phi, (nLayers, nFeatures)) - 1.0)
    atten = jnp.stack([radius * jnp.cos(phi), radius * jnp.sin(phi)],
                      axis=1).astype(jnp.float32)       # (L, 2, F)

    # --- complex input field --------------------------------------------------
    xr = jax.random.normal(k_in_r, (batch, nFeatures), jnp.float32)
    xi = jax.random.normal(k_in_i, (batch, nFeatures), jnp.float32)
    xs = jnp.concatenate([xr, xi], axis=0)              # (2B, F) stacked

    # --- layer transfer matrices + f32 reference ------------------------------
    M = build_layer_matrices(params, index, split, nFeatures)   # (L, 2, F, F)
    rr, ri = forward_psbs_ref(xr, xi, M, atten)

    run = jax.jit(forward_psbs_pallas, static_argnames=("layers_per_step",))

    # Three configs: fused (all layers in one step), 2 layers/step (exercises
    # the carried-output multi-step path), 3 layers/step (exercises the
    # cdiv + identity-padding tail path).
    yr = yi = None
    for lps in (None, 2, 3):
        out = jax.block_until_ready(run(xs, M, atten, layers_per_step=lps))
        yr, yi = out[:batch], out[batch:]

        # tight check vs numerics-matched bf16 reference
        m_packed, _, _ = prepare_packed(M, atten, lps)
        ref = forward_psbs_matched_ref(xs, m_packed, batch)
        assert jnp.allclose(out, ref, atol=1e-4, rtol=1e-4), f"kernel mismatch (lps={lps})"

        # loose sanity vs f32 Precision.HIGHEST reference (bounds bf16 drift
        # accumulated over the shallow layer chain).
        assert jnp.allclose(yr, rr, atol=5e-2, rtol=5e-2), f"real drift (lps={lps})"
        assert jnp.allclose(yi, ri, atol=5e-2, rtol=5e-2), f"imag drift (lps={lps})"

    out_complex = yr + 1j * yi                          # complex64 forwardPSBS output
    jax.block_until_ready(out_complex)
    print("KERNEL_OK")
</pallas_src>

<mosaic_0001>
module attributes {stable_mosaic.version = 11 : i64} {
  func.func @psbs_kernel(%arg0: i32, %arg1: memref<16x128xf32, #tpu.memory_space<vmem>>, %arg2: memref<4x128x256xbf16, #tpu.memory_space<vmem>>, %arg3: memref<16x128xf32, #tpu.memory_space<vmem>>) attributes {dimension_semantics = [#tpu.dimension_semantics<arbitrary>], iteration_bounds = array<i64: 1>, scalar_prefetch = 0 : i64, scratch_operands = 0 : i64, tpu.core_type = #tpu.core_type<tc>, window_params = [{pipeline_mode = #tpu.pipeline_mode<synchronous>, transform_indices = @transform_0, window_bounds = array<i64: 16, 128>}, {transform_indices = @transform_1, window_bounds = array<i64: 4, 128, 256>}, {pipeline_mode = #tpu.pipeline_mode<synchronous>, transform_indices = @transform_2, window_bounds = array<i64: 16, 128>}]} {
    %c0_i32 = arith.constant 0 : i32
    %0 = arith.cmpi eq, %arg0, %c0_i32 : i32
    %1 = arith.extui %0 : i1 to i32
    %c0_i32_0 = arith.constant 0 : i32
    %2 = arith.cmpi ne, %1, %c0_i32_0 : i32
    scf.if %2 {
      %c0_35 = arith.constant 0 : index
      %c0_36 = arith.constant 0 : index
      %59 = vector.load %arg1[%c0_35, %c0_36] : memref<16x128xf32, #tpu.memory_space<vmem>>, vector<16x128xf32>
      %c0_37 = arith.constant 0 : index
      %c0_38 = arith.constant 0 : index
      %60 = vector.load %arg3[%c0_37, %c0_38] : memref<16x128xf32, #tpu.memory_space<vmem>>, vector<16x128xf32>
      tpu.vector_store %arg3[%c0_37, %c0_38], %59 {strides = array<i32>} : memref<16x128xf32, #tpu.memory_space<vmem>>, vector<16x128xf32>,
    } else {
    }
    %c0_i32_1 = arith.constant 0 : i32
    %c0 = arith.constant 0 : index
    %c0_2 = arith.constant 0 : index
    %3 = vector.load %arg3[%c0, %c0_2] : memref<16x128xf32, #tpu.memory_space<vmem>>, vector<16x128xf32>
    %4 = arith.truncf %3 : vector<16x128xf32> to vector<16x128xbf16>
    %5 = arith.index_cast %c0_i32_1 : i32 to index
    %c0_3 = arith.constant 0 : index
    %c0_4 = arith.constant 0 : index
    %6 = vector.load %arg2[%5, %c0_3, %c0_4] : memref<4x128x256xbf16, #tpu.memory_space<vmem>>, vector<1x128x256xbf16>
    %7 = vector.shape_cast %6 : vector<1x128x256xbf16> to vector<128x256xbf16>
    %cst = arith.constant dense<0.000000e+00> : vector<16x256xf32>
    %8 = tpu.matmul %4, %7, %cst {dimension_numbers = #tpu.dot_dimension_numbers<[1], [0], [0], [1], [0, 0, 1, 1], [], []>} : vector<16x128xbf16>, vector<128x256xbf16>, vector<16x256xf32> -> vector<16x256xf32>
    %9 = vector.extract_strided_slice %8 {offsets = [0, 0], sizes = [8, 128], strides = [1, 1]} : vector<16x256xf32> to vector<8x128xf32>
    %10 = vector.extract_strided_slice %8 {offsets = [8, 128], sizes = [8, 128], strides = [1, 1]} : vector<16x256xf32> to vector<8x128xf32>
    %11 = arith.subf %9, %10 : vector<8x128xf32>
    %12 = vector.extract_strided_slice %8 {offsets = [0, 128], sizes = [8, 128], strides = [1, 1]} : vector<16x256xf32> to vector<8x128xf32>
    %13 = vector.extract_strided_slice %8 {offsets = [8, 0], sizes = [8, 128], strides = [1, 1]} : vector<16x256xf32> to vector<8x128xf32>
    %14 = arith.addf %12, %13 : vector<8x128xf32>
    %c0_5 = arith.constant 0 : index
    %c0_6 = arith.constant 0 : index
    %15 = vector.load %arg3[%c0_5, %c0_6] : memref<16x128xf32, #tpu.memory_space<vmem>>, vector<8x128xf32>
    tpu.vector_store %arg3[%c0_5, %c0_6], %11 {strides = array<i32>} : memref<16x128xf32, #tpu.memory_space<vmem>>, vector<8x128xf32>,
    %c8 = arith.constant 8 : index
    %c0_7 = arith.constant 0 : index
    %16 = vector.load %arg3[%c8, %c0_7] : memref<16x128xf32, #tpu.memory_space<vmem>>, vector<8x128xf32>
    tpu.vector_store %arg3[%c8, %c0_7], %14 {strides = array<i32>} : memref<16x128xf32, #tpu.memory_space<vmem>>, vector<8x128xf32>,
    %c1_i32 = arith.constant 1 : i32
    %c0_8 = arith.constant 0 : index
    %c0_9 = arith.constant 0 : index
    %17 = vector.load %arg3[%c0_8, %c0_9] : memref<16x128xf32, #tpu.memory_space<vmem>>, vector<16x128xf32>
    %18 = arith.truncf %17 : vector<16x128xf32> to vector<16x128xbf16>
    %19 = arith.index_cast %c1_i32 : i32 to index
    %c0_10 = arith.constant 0 : index
    %c0_11 = arith.constant 0 : index
    %20 = vector.load %arg2[%19, %c0_10, %c0_11] : memref<4x128x256xbf16, #tpu.memory_space<vmem>>, vector<1x128x256xbf16>
    %21 = vector.shape_cast %20 : vector<1x128x256xbf16> to vector<128x256xbf16>
    %cst_12 = arith.constant dense<0.000000e+00> : vector<16x256xf32>
    %22 = tpu.matmul %18, %21, %cst_12 {dimension_numbers = #tpu.dot_dimension_numbers<[1], [0], [0], [1], [0, 0, 1, 1], [], []>} : vector<16x128xbf16>, vector<128x256xbf16>, vector<16x256xf32> -> vector<16x256xf32>
    %23 = vector.extract_strided_slice %22 {offsets = [0, 0], sizes = [8, 128], strides = [1, 1]} : vector<16x256xf32> to vector<8x128xf32>
    %24 = vector.extract_strided_slice %22 {offsets = [8, 128], sizes = [8, 128], strides = [1, 1]} : vector<16x256xf32> to vector<8x128xf32>
    %25 = arith.subf %23, %24 : vector<8x128xf32>
    %26 = vector.extract_strided_slice %22 {offsets = [0, 128], sizes = [8, 128], strides = [1, 1]} : vector<16x256xf32> to vector<8x128xf32>
    %27 = vector.extract_strided_slice %22 {offsets = [8, 0], sizes = [8, 128], strides = [1, 1]} : vector<16x256xf32> to vector<8x128xf32>
    %28 = arith.addf %26, %27 : vector<8x128xf32>
    %c0_13 = arith.constant 0 : index
    %c0_14 = arith.constant 0 : index
    %29 = vector.load %arg3[%c0_13, %c0_14] : memref<16x128xf32, #tpu.memory_space<vmem>>, vector<8x128xf32>
    tpu.vector_store %arg3[%c0_13, %c0_14], %25 {strides = array<i32>} : memref<16x128xf32, #tpu.memory_space<vmem>>, vector<8x128xf32>,
    %c8_15 = arith.constant 8 : index
    %c0_16 = arith.constant 0 : index
    %30 = vector.load %arg3[%c8_15, %c0_16] : memref<16x128xf32, #tpu.memory_space<vmem>>, vector<8x128xf32>
    tpu.vector_store %arg3[%c8_15, %c0_16], %28 {strides = array<i32>} : memref<16x128xf32, #tpu.memory_space<vmem>>, vector<8x128xf32>,
    %c2_i32 = arith.constant 2 : i32
    %c0_17 = arith.constant 0 : index
    %c0_18 = arith.constant 0 : index
    %31 = vector.load %arg3[%c0_17, %c0_18] : memref<16x128xf32, #tpu.memory_space<vmem>>, vector<16x128xf32>
    %32 = arith.truncf %31 : vector<16x128xf32> to vector<16x128xbf16>
    %33 = arith.index_cast %c2_i32 : i32 to index
    %c0_19 = arith.constant 0 : index
    %c0_20 = arith.constant 0 : index
    %34 = vector.load %arg2[%33, %c0_19, %c0_20] : memref<4x128x256xbf16, #tpu.memory_space<vmem>>, vector<1x128x256xbf16>
    %35 = vector.shape_cast %34 : vector<1x128x256xbf16> to vector<128x256xbf16>
    %cst_21 = arith.constant dense<0.000000e+00> : vector<16x256xf32>
    %36 = tpu.matmul %32, %35, %cst_21 {dimension_numbers = #tpu.dot_dimension_numbers<[1], [0], [0], [1], [0, 0, 1, 1], [], []>} : vector<16x128xbf16>, vector<128x256xbf16>, vector<16x256xf32> -> vector<16x256xf32>
    %37 = vector.extract_strided_slice %36 {offsets = [0, 0], sizes = [8, 128], strides = [1, 1]} : vector<16x256xf32> to vector<8x128xf32>
    %38 = vector.extract_strided_slice %36 {offsets = [8, 128], sizes = [8, 128], strides = [1, 1]} : vector<16x256xf32> to vector<8x128xf32>
    %39 = arith.subf %37, %38 : vector<8x128xf32>
    %40 = vector.extract_strided_slice %36 {offsets = [0, 128], sizes = [8, 128], strides = [1, 1]} : vector<16x256xf32> to vector<8x128xf32>
    %41 = vector.extract_strided_slice %36 {offsets = [8, 0], sizes = [8, 128], strides = [1, 1]} : vector<16x256xf32> to vector<8x128xf32>
    %42 = arith.addf %40, %41 : vector<8x128xf32>
    %c0_22 = arith.constant 0 : index
    %c0_23 = arith.constant 0 : index
    %43 = vector.load %arg3[%c0_22, %c0_23] : memref<16x128xf32, #tpu.memory_space<vmem>>, vector<8x128xf32>
    tpu.vector_store %arg3[%c0_22, %c0_23], %39 {strides = array<i32>} : memref<16x128xf32, #tpu.memory_space<vmem>>, vector<8x128xf32>,
    %c8_24 = arith.constant 8 : index
    %c0_25 = arith.constant 0 : index
    %44 = vector.load %arg3[%c8_24, %c0_25] : memref<16x128xf32, #tpu.memory_space<vmem>>, vector<8x128xf32>
    tpu.vector_store %arg3[%c8_24, %c0_25], %42 {strides = array<i32>} : memref<16x128xf32, #tpu.memory_space<vmem>>, vector<8x128xf32>,
    %c3_i32 = arith.constant 3 : i32
    %c0_26 = arith.constant 0 : index
    %c0_27 = arith.constant 0 : index
    %45 = vector.load %arg3[%c0_26, %c0_27] : memref<16x128xf32, #tpu.memory_space<vmem>>, vector<16x128xf32>
    %46 = arith.truncf %45 : vector<16x128xf32> to vector<16x128xbf16>
    %47 = arith.index_cast %c3_i32 : i32 to index
    %c0_28 = arith.constant 0 : index
    %c0_29 = arith.constant 0 : index
    %48 = vector.load %arg2[%47, %c0_28, %c0_29] : memref<4x128x256xbf16, #tpu.memory_space<vmem>>, vector<1x128x256xbf16>
    %49 = vector.shape_cast %48 : vector<1x128x256xbf16> to vector<128x256xbf16>
    %cst_30 = arith.constant dense<0.000000e+00> : vector<16x256xf32>
    %50 = tpu.matmul %46, %49, %cst_30 {dimension_numbers = #tpu.dot_dimension_numbers<[1], [0], [0], [1], [0, 0, 1, 1], [], []>} : vector<16x128xbf16>, vector<128x256xbf16>, vector<16x256xf32> -> vector<16x256xf32>
    %51 = vector.extract_strided_slice %50 {offsets = [0, 0], sizes = [8, 128], strides = [1, 1]} : vector<16x256xf32> to vector<8x128xf32>
    %52 = vector.extract_strided_slice %50 {offsets = [8, 128], sizes = [8, 128], strides = [1, 1]} : vector<16x256xf32> to vector<8x128xf32>
    %53 = arith.subf %51, %52 : vector<8x128xf32>
    %54 = vector.extract_strided_slice %50 {offsets = [0, 128], sizes = [8, 128], strides = [1, 1]} : vector<16x256xf32> to vector<8x128xf32>
    %55 = vector.extract_strided_slice %50 {offsets = [8, 0], sizes = [8, 128], strides = [1, 1]} : vector<16x256xf32> to vector<8x128xf32>
    %56 = arith.addf %54, %55 : vector<8x128xf32>
    %c0_31 = arith.constant 0 : index
    %c0_32 = arith.constant 0 : index
    %57 = vector.load %arg3[%c0_31, %c0_32] : memref<16x128xf32, #tpu.memory_space<vmem>>, vector<8x128xf32>
    tpu.vector_store %arg3[%c0_31, %c0_32], %53 {strides = array<i32>} : memref<16x128xf32, #tpu.memory_space<vmem>>, vector<8x128xf32>,
    %c8_33 = arith.constant 8 : index
    %c0_34 = arith.constant 0 : index
    %58 = vector.load %arg3[%c8_33, %c0_34] : memref<16x128xf32, #tpu.memory_space<vmem>>, vector<8x128xf32>
    tpu.vector_store %arg3[%c8_33, %c0_34], %56 {strides = array<i32>} : memref<16x128xf32, #tpu.memory_space<vmem>>, vector<8x128xf32>,
    %c4_i32 = arith.constant 4 : i32
    return
  }
  func.func @transform_0(%arg0: i32) -> (i32, i32) {
    %c0_i32 = arith.constant 0 : i32
    %c0_i32_0 = arith.constant 0 : i32
    %c0_i32_1 = arith.constant 0 : i32
    return %c0_i32, %c0_i32_0 : i32, i32
  }
  func.func @transform_1(%arg0: i32) -> (i32, i32, i32) {
    %c0_i32 = arith.constant 0 : i32
    %c0_i32_0 = arith.constant 0 : i32
    %c0_i32_1 = arith.constant 0 : i32
    return %arg0, %c0_i32, %c0_i32_0 : i32, i32, i32
  }
  func.func @transform_2(%arg0: i32) -> (i32, i32) {
    %c0_i32 = arith.constant 0 : i32
    %c0_i32_0 = arith.constant 0 : i32
    %c0_i32_1 = arith.constant 0 : i32
    return %c0_i32, %c0_i32_0 : i32, i32
  }
}

</mosaic_0001>

<bundles_post_ra>
// kernel: forward_psbs_pallas.1
= control target key start
LH: loop header
LB: loop body
LE: loop exit
PB: predicated region body
PF: predicated region fallthrough
CT: control target
= control target key end

     0   :  { %s1373_s0 = inlined_call_operand.vmem [shape: f32[16,128], index: 0, kind: input, shape index: {}]   ;;  %s1374_s1 = inlined_call_operand.vmem [shape: bf16[4,128,256], index: 1, kind: input, shape index: {}]   ;;  %s1375_s2 = inlined_call_operand.hbm [shape: f32[16,128], index: 2, kind: output, shape index: {}]  }
   0x1   :  { %v623_v0 = vld [vmem:[%s1374_s1 + $0x70] sm:$0xf]  ;;  %v884_v1 = vld [vmem:[%s1374_s1 + $0x74] sm:$0xf0]  ;;  %v883_v2 = vld [vmem:[%s1374_s1 + $0x74] sm:$0xf] }
   0x2   :  { %v624_v3 = vor.u32 %v884_v1, %v623_v0  ;;  %v625_v4 = vld [vmem:[%s1374_s1 + $0x78] sm:$0xf0]  ;;  %v615_v5 = vld [vmem:[%s1374_s1 + $0x60] sm:$0xf]  ;;  %v882_v6 = vld [vmem:[%s1374_s1 + $0x64] sm:$0xf0] }
   0x3   :  { %v628_v7 = vor.u32 %v883_v2, %v625_v4  ;;  %v881_v8 = vld [vmem:[%s1374_s1 + $0x64] sm:$0xf]  ;;  %v617_v9 = vld [vmem:[%s1374_s1 + $0x68] sm:$0xf0]  ;;  %v616_v10 = vor.u32 %v882_v6, %v615_v5  ;;  %v607_v12 = vld [vmem:[%s1374_s1 + $0x50] sm:$0xf] }
   0x4   :  { %119 = vmatpush.bf16.msra.mxu0 %v624_v3  ;;  %v620_v11 = vor.u32 %v881_v8, %v617_v9  ;;  %v880_v13 = vld [vmem:[%s1374_s1 + $0x54] sm:$0xf0]  ;;  %v879_v14 = vld [vmem:[%s1374_s1 + $0x54] sm:$0xf]  ;;  %v609_v15 = vld [vmem:[%s1374_s1 + $0x58] sm:$0xf0] }
   0x5   :  { %133 = vmatpush.bf16.msra.mxu1 %v628_v7  ;;  %v608_v16 = vor.u32 %v880_v13, %v607_v12  ;;  %v612_v17 = vor.u32 %v879_v14, %v609_v15  ;;  %v599_v18 = vld [vmem:[%s1374_s1 + $0x40] sm:$0xf]  ;;  %v878_v19 = vld [vmem:[%s1374_s1 + $0x44] sm:$0xf0]  ;;  %v877_v20 = vld [vmem:[%s1374_s1 + $0x44] sm:$0xf] }
   0x6   :  { %v601_v21 = vld [vmem:[%s1374_s1 + $0x48] sm:$0xf0]  ;;  %v591_v22 = vld [vmem:[%s1374_s1 + $0x30] sm:$0xf]  ;;  %v876_v23 = vld [vmem:[%s1374_s1 + $0x34] sm:$0xf0]  ;;  %v600_v24 = vor.u32 %v878_v19, %v599_v18 }
   0x7   :  { %v875_v25 = vld [vmem:[%s1374_s1 + $0x34] sm:$0xf]  ;;  %v593_v26 = vld [vmem:[%s1374_s1 + $0x38] sm:$0xf0]  ;;  %v703_v27 = vld [vmem:[%s1374_s1 + $0xf0] sm:$0xf]  ;;  %v604_v29 = vor.u32 %v877_v20, %v601_v21  ;;  %v592_v40 = vor.u32 %v876_v23, %v591_v22 }
   0x8   :  { %120 = vmatpush.bf16.msra.mxu0 %v616_v10  ;;  %v900_v28 = vld [vmem:[%s1374_s1 + $0xf4] sm:$0xf0]  ;;  %v899_v31 = vld [vmem:[%s1374_s1 + $0xf4] sm:$0xf]  ;;  %v705_v32 = vld [vmem:[%s1374_s1 + $0xf8] sm:$0xf0] }
   0x9   :  { %134 = vmatpush.bf16.msra.mxu1 %v620_v11  ;;  %v704_v30 = vor.u32 %v900_v28, %v703_v27  ;;  %v695_v33 = vld [vmem:[%s1374_s1 + $0xe0] sm:$0xf]  ;;  %v708_v34 = vor.u32 %v899_v31, %v705_v32  ;;  %v898_v35 = vld [vmem:[%s1374_s1 + $0xe4] sm:$0xf0]  ;;  %v897_v36 = vld [vmem:[%s1374_s1 + $0xe4] sm:$0xf] }
   0xa   :  { %v697_v37 = vld [vmem:[%s1374_s1 + $0xe8] sm:$0xf0]  ;;  %v583_v38 = vld [vmem:[%s1374_s1 + $0x20] sm:$0xf]  ;;  %v696_v39 = vor.u32 %v898_v35, %v695_v33  ;;  %v687_v42 = vld [vmem:[%s1374_s1 + $0xd0] sm:$0xf] }
   0xb   :  { %251 = vmatpush.bf16.msra.mxu2 %v704_v30  ;;  %265 = vmatpush.bf16.msra.mxu3 %v708_v34  ;;  %v700_v41 = vor.u32 %v897_v36, %v697_v37  ;;  %v896_v43 = vld [vmem:[%s1374_s1 + $0xd4] sm:$0xf0] }
   0xc   :  { %121 = vmatpush.bf16.msra.mxu0 %v608_v16 }
   0xd   :  { %135 = vmatpush.bf16.msra.mxu1 %v612_v17 }
  0x10   :  { %122 = vmatpush.bf16.msra.mxu0 %v600_v24 }
  0x11   :  { %7 = vsyncpa [#allocation3], 0  ;;  %136 = vmatpush.bf16.msra.mxu1 %v604_v29  ;;  %v596_v44 = vor.u32 %v875_v25, %v593_v26  ;;  %v874_v45 = vld [vmem:[%s1374_s1 + $0x24] sm:$0xf0]  ;;  %v895_v46 = vld [vmem:[%s1374_s1 + $0xd4] sm:$0xf]  ;;  %252 = vmatpush.bf16.msra.mxu2 %v696_v39  ;;  %v688_v50 = vor.u32 %v896_v43, %v687_v42 }
  0x12   :  { %v689_v47 = vld [vmem:[%s1374_s1 + $0xd8] sm:$0xf0]  ;;  %v873_v48 = vld [vmem:[%s1374_s1 + $0x24] sm:$0xf]  ;;  %v585_v49 = vld [vmem:[%s1374_s1 + $0x28] sm:$0xf0]  ;;  %v584_v51 = vor.u32 %v874_v45, %v583_v38  ;;  %266 = vmatpush.bf16.msra.mxu3 %v700_v41 }
  0x13   :  { %v692_v52 = vor.u32 %v895_v46, %v689_v47  ;;  %v588_v53 = vor.u32 %v873_v48, %v585_v49  ;;  %v575_v54 = vld [vmem:[%s1374_s1 + $0x10] sm:$0xf]  ;;  %v872_v55 = vld [vmem:[%s1374_s1 + $0x14] sm:$0xf0]  ;;  %v871_v56 = vld [vmem:[%s1374_s1 + $0x14] sm:$0xf] }
  0x14   :  { %123 = vmatpush.bf16.msra.mxu0 %v592_v40  ;;  %v577_v57 = vld [vmem:[%s1374_s1 + $0x18] sm:$0xf0]  ;;  %v576_v58 = vor.u32 %v872_v55, %v575_v54  ;;  %v567_v60 = vld [vmem:[%s1374_s1] sm:$0xf]  ;;  %v870_v61 = vld [vmem:[%s1374_s1 + $0x4] sm:$0xf0] }
  0x15   :  { %137 = vmatpush.bf16.msra.mxu1 %v596_v44  ;;  %253 = vmatpush.bf16.msra.mxu2 %v688_v50  ;;  %v580_v59 = vor.u32 %v871_v56, %v577_v57  ;;  %v869_v62 = vld [vmem:[%s1374_s1 + $0x4] sm:$0xf]  ;;  %v569_v63 = vld [vmem:[%s1374_s1 + $0x8] sm:$0xf0]  ;;  %v568_v0 = vor.u32 %v870_v61, %v567_v60  ;;  %v679_v5 = vld [vmem:[%s1374_s1 + $0xc0] sm:$0xf] }
  0x16   :  { %267 = vmatpush.bf16.msra.mxu3 %v692_v52  ;;  %v16_v1 = vld [vmem:[%s1373_s0] sm:$0xff]  ;;  %v17_v2 = vld [vmem:[%s1373_s0 + $0x8] sm:$0xff]  ;;  %v572_v3 = vor.u32 %v869_v62, %v569_v63  ;;  %v671_v11 = vld [vmem:[%s1374_s1 + $0xb0] sm:$0xf]  ;;  %s962_s11 = smov [#allocation2]   ;;  %s963_s15 = smov 128  }
  0x17   :  { %v22_v4 = vpack.c.bf16 %v17_v2, %v16_v1  ;;  %v894_v6 = vld [vmem:[%s1374_s1 + $0xc4] sm:$0xf0]  ;;  %v893_v7 = vld [vmem:[%s1374_s1 + $0xc4] sm:$0xf]  ;;  %v681_v9 = vld [vmem:[%s1374_s1 + $0xc8] sm:$0xf0] }
  0x18   :  { %124 = vmatpush.bf16.msra.mxu0 %v584_v51  ;;  %v680_v8 = vor.u32 %v894_v6, %v679_v5  ;;  %v684_v10 = vor.u32 %v893_v7, %v681_v9  ;;  %v892_v12 = vld [vmem:[%s1374_s1 + $0xb4] sm:$0xf0]  ;;  %v891_v13 = vld [vmem:[%s1374_s1 + $0xb4] sm:$0xf]  ;;  %v673_v15 = vld [vmem:[%s1374_s1 + $0xb8] sm:$0xf0] }
  0x19   :  { %138 = vmatpush.bf16.msra.mxu1 %v588_v53  ;;  %v672_v14 = vor.u32 %v892_v12, %v671_v11  ;;  %v676_v16 = vor.u32 %v891_v13, %v673_v15  ;;  %v663_v17 = vld [vmem:[%s1374_s1 + $0xa0] sm:$0xf]  ;;  %v890_v18 = vld [vmem:[%s1374_s1 + $0xa4] sm:$0xf0]  ;;  %v889_v19 = vld [vmem:[%s1374_s1 + $0xa4] sm:$0xf] }
  0x1a   :  { %254 = vmatpush.bf16.msra.mxu2 %v680_v8  ;;  %268 = vmatpush.bf16.msra.mxu3 %v684_v10  ;;  %v664_v20 = vor.u32 %v890_v18, %v663_v17  ;;  %v665_v21 = vld [vmem:[%s1374_s1 + $0xa8] sm:$0xf0]  ;;  %v655_v23 = vld [vmem:[%s1374_s1 + $0x90] sm:$0xf]  ;;  %v888_v24 = vld [vmem:[%s1374_s1 + $0x94] sm:$0xf0] }
  0x1b   :  { %v668_v22 = vor.u32 %v889_v19, %v665_v21  ;;  %v887_v25 = vld [vmem:[%s1374_s1 + $0x94] sm:$0xf]  ;;  %v656_v26 = vor.u32 %v888_v24, %v655_v23  ;;  %v657_v27 = vld [vmem:[%s1374_s1 + $0x98] sm:$0xf0]  ;;  %v647_v29 = vld [vmem:[%s1374_s1 + $0x80] sm:$0xf] }
  0x1c   :  { %125 = vmatpush.bf16.msra.mxu0 %v576_v58  ;;  %v660_v28 = vor.u32 %v887_v25, %v657_v27  ;;  %v886_v30 = vld [vmem:[%s1374_s1 + $0x84] sm:$0xf0]  ;;  %v885_v31 = vld [vmem:[%s1374_s1 + $0x84] sm:$0xf]  ;;  %v649_v33 = vld [vmem:[%s1374_s1 + $0x88] sm:$0xf0] }
  0x1d   :  { %139 = vmatpush.bf16.msra.mxu1 %v580_v59  ;;  %v648_v32 = vor.u32 %v886_v30, %v647_v29  ;;  %v652_v34 = vor.u32 %v885_v31, %v649_v33  ;;  %v783_v35 = vld [vmem:[%s1374_s1 + $0x170] sm:$0xf]  ;;  %v916_v36 = vld [vmem:[%s1374_s1 + $0x174] sm:$0xf0]  ;;  %v915_v37 = vld [vmem:[%s1374_s1 + $0x174] sm:$0xf] }
  0x1e   :  { %255 = vmatpush.bf16.msra.mxu2 %v672_v14  ;;  %269 = vmatpush.bf16.msra.mxu3 %v676_v16  ;;  %v784_v38 = vor.u32 %v916_v36, %v783_v35  ;;  %v785_v39 = vld [vmem:[%s1374_s1 + $0x178] sm:$0xf0]  ;;  %v775_v40 = vld [vmem:[%s1374_s1 + $0x160] sm:$0xf]  ;;  %v914_v41 = vld [vmem:[%s1374_s1 + $0x164] sm:$0xf0] }
  0x1f   :  { %v788_v42 = vor.u32 %v915_v37, %v785_v39  ;;  %v913_v43 = vld [vmem:[%s1374_s1 + $0x164] sm:$0xf]  ;;  %v777_v44 = vld [vmem:[%s1374_s1 + $0x168] sm:$0xf0]  ;;  %v776_v45 = vor.u32 %v914_v41, %v775_v40  ;;  %v767_v47 = vld [vmem:[%s1374_s1 + $0x150] sm:$0xf] }
  0x20   :  { %126 = vmatpush.bf16.msra.mxu0 %v568_v0  ;;  %v780_v46 = vor.u32 %v913_v43, %v777_v44  ;;  %v912_v48 = vld [vmem:[%s1374_s1 + $0x154] sm:$0xf0]  ;;  %v911_v49 = vld [vmem:[%s1374_s1 + $0x154] sm:$0xf]  ;;  %v769_v50 = vld [vmem:[%s1374_s1 + $0x158] sm:$0xf0] }
  0x21   :  { %140 = vmatpush.bf16.msra.mxu1 %v572_v3  ;;  %v768_v51 = vor.u32 %v912_v48, %v767_v47  ;;  %v772_v52 = vor.u32 %v911_v49, %v769_v50  ;;  %v759_v60 = vld [vmem:[%s1374_s1 + $0x140] sm:$0xf]  ;;  %v910_v61 = vld [vmem:[%s1374_s1 + $0x144] sm:$0xf0]  ;;  %v909_v62 = vld [vmem:[%s1374_s1 + $0x144] sm:$0xf] }
  0x22   :  { %256 = vmatpush.bf16.msra.mxu2 %v664_v20  ;;  %270 = vmatpush.bf16.msra.mxu3 %v668_v22  ;;  %v760_v63 = vor.u32 %v910_v61, %v759_v60  ;;  %v761_v0 = vld [vmem:[%s1374_s1 + $0x148] sm:$0xf0]  ;;  %v751_v2 = vld [vmem:[%s1374_s1 + $0x130] sm:$0xf]  ;;  %v908_v3 = vld [vmem:[%s1374_s1 + $0x134] sm:$0xf0] }
  0x23   :  { %127 = vmatmul.bf16.vlgmr.msra.gmra.mxu0 %v22_v4  ;;  %v764_v1 = vor.u32 %v909_v62, %v761_v0  ;;  %v752_v5 = vor.u32 %v908_v3, %v751_v2  ;;  %v753_v6 = vld [vmem:[%s1374_s1 + $0x138] sm:$0xf0]  ;;  %v743_v8 = vld [vmem:[%s1374_s1 + $0x120] sm:$0xf]  ;;  %v906_v9 = vld [vmem:[%s1374_s1 + $0x124] sm:$0xf0] }
  0x24   :  { %141 = vmatmul.bf16.vlgmr.msra.gmra.mxu1 %v22_v4  ;;  %383 = vmatpush.bf16.msrb.mxu0 %v784_v38  ;;  %v907_v4 = vld [vmem:[%s1374_s1 + $0x134] sm:$0xf]  ;;  %v905_v10 = vld [vmem:[%s1374_s1 + $0x124] sm:$0xf]  ;;  %v744_v11 = vor.u32 %v906_v9, %v743_v8  ;;  %v745_v12 = vld [vmem:[%s1374_s1 + $0x128] sm:$0xf0] }
  0x25   :  { %397 = vmatpush.bf16.msrb.mxu1 %v788_v42  ;;  %v756_v7 = vor.u32 %v907_v4, %v753_v6  ;;  %v748_v13 = vor.u32 %v905_v10, %v745_v12  ;;  %v735_v14 = vld [vmem:[%s1374_s1 + $0x110] sm:$0xf]  ;;  %v904_v15 = vld [vmem:[%s1374_s1 + $0x114] sm:$0xf0]  ;;  %v903_v16 = vld [vmem:[%s1374_s1 + $0x114] sm:$0xf] }
  0x26   :  { %257 = vmatpush.bf16.msra.mxu2 %v656_v26  ;;  %271 = vmatpush.bf16.msra.mxu3 %v660_v28  ;;  %v736_v17 = vor.u32 %v904_v15, %v735_v14  ;;  %v737_v18 = vld [vmem:[%s1374_s1 + $0x118] sm:$0xf0]  ;;  %v727_v20 = vld [vmem:[%s1374_s1 + $0x100] sm:$0xf]  ;;  %v902_v21 = vld [vmem:[%s1374_s1 + $0x104] sm:$0xf0] }
  0x27   :  { %v740_v19 = vor.u32 %v903_v16, %v737_v18  ;;  %v901_v22 = vld [vmem:[%s1374_s1 + $0x104] sm:$0xf]  ;;  %v728_v23 = vor.u32 %v902_v21, %v727_v20  ;;  %v729_v24 = vld [vmem:[%s1374_s1 + $0x108] sm:$0xf0]  ;;  %v863_v26 = vld [vmem:[%s1374_s1 + $0x1f0] sm:$0xf] }
  0x28   :  { %384 = vmatpush.bf16.msrb.mxu0 %v776_v45  ;;  %v732_v25 = vor.u32 %v901_v22, %v729_v24  ;;  %v932_v27 = vld [vmem:[%s1374_s1 + $0x1f4] sm:$0xf0]  ;;  %v931_v28 = vld [vmem:[%s1374_s1 + $0x1f4] sm:$0xf]  ;;  %v865_v30 = vld [vmem:[%s1374_s1 + $0x1f8] sm:$0xf0] }
  0x29   :  { %398 = vmatpush.bf16.msrb.mxu1 %v780_v46  ;;  %v864_v29 = vor.u32 %v932_v27, %v863_v26  ;;  %v855_v31 = vld [vmem:[%s1374_s1 + $0x1e0] sm:$0xf]  ;;  %v868_v33 = vor.u32 %v931_v28, %v865_v30  ;;  %v857_v35 = vld [vmem:[%s1374_s1 + $0x1e8] sm:$0xf0]  ;;  %v847_v38 = vld [vmem:[%s1374_s1 + $0x1d0] sm:$0xf] }
  0x2a   :  { %258 = vmatpush.bf16.msra.mxu2 %v648_v32  ;;  %272 = vmatpush.bf16.msra.mxu3 %v652_v34  ;;  %v930_v32 = vld [vmem:[%s1374_s1 + $0x1e4] sm:$0xf0]  ;;  %v929_v34 = vld [vmem:[%s1374_s1 + $0x1e4] sm:$0xf]  ;;  %v928_v39 = vld [vmem:[%s1374_s1 + $0x1d4] sm:$0xf0] }
  0x2b   :  { %v856_v36 = vor.u32 %v930_v32, %v855_v31  ;;  %v860_v37 = vor.u32 %v929_v34, %v857_v35  ;;  %v927_v40 = vld [vmem:[%s1374_s1 + $0x1d4] sm:$0xf]  ;;  %v849_v41 = vld [vmem:[%s1374_s1 + $0x1d8] sm:$0xf0]  ;;  %v848_v42 = vor.u32 %v928_v39, %v847_v38  ;;  %v922_v0 = vld [vmem:[%s1374_s1 + $0x1a4] sm:$0xf0] }
  0x2c   :  { %385 = vmatpush.bf16.msrb.mxu0 %v768_v51  ;;  %v852_v43 = vor.u32 %v927_v40, %v849_v41  ;;  %v839_v51 = vld [vmem:[%s1374_s1 + $0x1c0] sm:$0xf]  ;;  %v833_v61 = vld [vmem:[%s1374_s1 + $0x1b8] sm:$0xf0]  ;;  %v825_v3 = vld [vmem:[%s1374_s1 + $0x1a8] sm:$0xf0] }
  0x2d   :  { %399 = vmatpush.bf16.msrb.mxu1 %v772_v52  ;;  %v926_v52 = vld [vmem:[%s1374_s1 + $0x1c4] sm:$0xf0]  ;;  %v920_v6 = vld [vmem:[%s1374_s1 + $0x194] sm:$0xf0]  ;;  %v817_v9 = vld [vmem:[%s1374_s1 + $0x198] sm:$0xf0] }
  0x2e   :  { %515 = vmatpush.bf16.msrb.mxu2 %v864_v29  ;;  %529 = vmatpush.bf16.msrb.mxu3 %v868_v33  ;;  %v918_v12 = vld [vmem:[%s1374_s1 + $0x184] sm:$0xf0]  ;;  %v809_v15 = vld [vmem:[%s1374_s1 + $0x188] sm:$0xf0]  ;;  %s551_s12 = sshll.u32 %s962_s11, 4  ;;  %s964_s16 = smov 8   ;;  %s552_s12 = int_to_ptr.vmem [resolvable:$true] %s551_s12 }
  0x30   :  { %386 = vmatpush.bf16.msrb.mxu0 %v760_v63  ;;  %v823_v63 = vld [vmem:[%s1374_s1 + $0x1a0] sm:$0xf] }
  0x31   :  { %400 = vmatpush.bf16.msrb.mxu1 %v764_v1  ;;  %v921_v1 = vld [vmem:[%s1374_s1 + $0x1a4] sm:$0xf]  ;;  %v824_v2 = vor.u32 %v922_v0, %v823_v63 }
  0x32   :  { %516 = vmatpush.bf16.msrb.mxu2 %v856_v36  ;;  %530 = vmatpush.bf16.msrb.mxu3 %v860_v37  ;;  %v828_v4 = vor.u32 %v921_v1, %v825_v3 }
  0x34   :  { %387 = vmatpush.bf16.msrb.mxu0 %v752_v5  ;;  %v815_v5 = vld [vmem:[%s1374_s1 + $0x190] sm:$0xf] }
  0x35   :  { %401 = vmatpush.bf16.msrb.mxu1 %v756_v7  ;;  %v919_v7 = vld [vmem:[%s1374_s1 + $0x194] sm:$0xf]  ;;  %v816_v8 = vor.u32 %v920_v6, %v815_v5 }
  0x36   :  { %517 = vmatpush.bf16.msrb.mxu2 %v848_v42  ;;  %531 = vmatpush.bf16.msrb.mxu3 %v852_v43  ;;  %v820_v10 = vor.u32 %v919_v7, %v817_v9 }
  0x38   :  { %388 = vmatpush.bf16.msrb.mxu0 %v744_v11  ;;  %v807_v11 = vld [vmem:[%s1374_s1 + $0x180] sm:$0xf] }
  0x39   :  { %402 = vmatpush.bf16.msrb.mxu1 %v748_v13  ;;  %v917_v13 = vld [vmem:[%s1374_s1 + $0x184] sm:$0xf]  ;;  %v808_v14 = vor.u32 %v918_v12, %v807_v11 }
  0x3a   :  { %v812_v16 = vor.u32 %v917_v13, %v809_v15 }
  0x3c   :  { %389 = vmatpush.bf16.msrb.mxu0 %v736_v17 }
  0x3d   :  { %403 = vmatpush.bf16.msrb.mxu1 %v740_v19 }
  0x40   :  { %390 = vmatpush.bf16.msrb.mxu0 %v728_v23 }
  0x41   :  { %404 = vmatpush.bf16.msrb.mxu1 %v732_v25 }
  0xa0   :  { %v128_v53 = vpop.f32.mrf.mxu0 }
  0xa1   :  { %v142_v54 = vpop.f32.mrf.mxu1 }
  0xa8   :  { %v130_v55 = vpop.f32.mrf.mxu0 }
  0xa9   :  { %v148_v56 = vadd.f32 %v142_v54, %v130_v55  ;;  %v144_v57 = vpop.f32.mrf.mxu1  ;;  %v840_v54 = vor.u32 %v926_v52, %v839_v51  ;;  %v841_v55 = vld [vmem:[%s1374_s1 + $0x1c8] sm:$0xf0] }
  0xaa   :  { %v147_v58 = vsub.f32 %v128_v53, %v144_v57  ;;  %v925_v53 = vld [vmem:[%s1374_s1 + $0x1c4] sm:$0xf]  ;;  %v831_v57 = vld [vmem:[%s1374_s1 + $0x1b0] sm:$0xf] }
  0xab   :  { %518 = vmatpush.bf16.msrb.mxu2 %v840_v54 }
  0xac   :  { %v153_v59 = vpack.c.bf16 %v148_v56, %v147_v58  ;;  %v844_v56 = vor.u32 %v925_v53, %v841_v55  ;;  %v924_v58 = vld [vmem:[%s1374_s1 + $0x1b4] sm:$0xf0] }
  0xad   :  { %v832_v60 = vor.u32 %v924_v58, %v831_v57 }
  0xae   :  { %259 = vmatmul.bf16.vlgmr.msra.gmra.mxu2 %v153_v59  ;;  %273 = vmatmul.bf16.vlgmr.msra.gmra.mxu3 %v153_v59  ;;  %v923_v59 = vld [vmem:[%s1374_s1 + $0x1b4] sm:$0xf]  ;;  %s553_s1 = sshll.u32 %s1375_s2, 4  ;;  %s554_s1 = int_to_ptr.hbm [resolvable:$true] %s553_s1 }
  0xaf   :  { %532 = vmatpush.bf16.msrb.mxu3 %v844_v56  ;;  %v836_v62 = vor.u32 %v923_v59, %v833_v61  ;;  %519 = vmatpush.bf16.msrb.mxu2 %v832_v60 }
  0xb3   :  { %533 = vmatpush.bf16.msrb.mxu3 %v836_v62  ;;  %520 = vmatpush.bf16.msrb.mxu2 %v824_v2 }
  0xb7   :  { %534 = vmatpush.bf16.msrb.mxu3 %v828_v4  ;;  %521 = vmatpush.bf16.msrb.mxu2 %v816_v8 }
  0xbb   :  { %535 = vmatpush.bf16.msrb.mxu3 %v820_v10  ;;  %522 = vmatpush.bf16.msrb.mxu2 %v808_v14 }
  0xbf   :  { %536 = vmatpush.bf16.msrb.mxu3 %v812_v16 }
 0x131   :  { %v260_v44 = vpop.f32.mrf.mxu2  ;;  %v274_v45 = vpop.f32.mrf.mxu3 }
 0x139   :  { %v262_v46 = vpop.f32.mrf.mxu2  ;;  %v276_v47 = vpop.f32.mrf.mxu3 }
 0x13a   :  { %v280_v48 = vadd.f32 %v274_v45, %v262_v46  ;;  %v279_v49 = vsub.f32 %v260_v44, %v276_v47 }
 0x13c   :  { %v285_v50 = vpack.c.bf16 %v280_v48, %v279_v49 }
 0x13e   :  { %391 = vmatmul.bf16.vlgmr.msrb.gmra.mxu0 %v285_v50  ;;  %405 = vmatmul.bf16.vlgmr.msrb.gmra.mxu1 %v285_v50 }
 0x1bb   :  { %v392_v17 = vpop.f32.mrf.mxu0  ;;  %v406_v18 = vpop.f32.mrf.mxu1 }
 0x1c3   :  { %v394_v19 = vpop.f32.mrf.mxu0  ;;  %v408_v20 = vpop.f32.mrf.mxu1 }
 0x1c4   :  { %v412_v21 = vadd.f32 %v406_v18, %v394_v19  ;;  %v411_v22 = vsub.f32 %v392_v17, %v408_v20 }
 0x1c6   :  { %v417_v23 = vpack.c.bf16 %v412_v21, %v411_v22 }
 0x1c8   :  { %523 = vmatmul.bf16.vlgmr.msrb.gmra.mxu2 %v417_v23  ;;  %537 = vmatmul.bf16.vlgmr.msrb.gmra.mxu3 %v417_v23 }
 0x24b   :  { %v524_v24 = vpop.f32.mrf.mxu2  ;;  %v538_v25 = vpop.f32.mrf.mxu3 }
 0x253   :  { %v526_v26 = vpop.f32.mrf.mxu2  ;;  %v540_v27 = vpop.f32.mrf.mxu3 }
 0x254   :  { %v544_v28 = vadd.f32 %v538_v25, %v526_v26  ;;  %v543_v29 = vsub.f32 %v524_v24, %v540_v27 }
 0x256   :  { %546 = vst [vmem:[#allocation2 + $0x8] sm:$0xff] %v544_v28 }
 0x257   :  { %545 = vst [vmem:[#allocation2] sm:$0xff] %v543_v29 }
 0x258   :  { %559 = dma.vmem_to_hbm [thread:$0]  %s552_s12, 256, %s554_s1, [#allocation3], %s963_s15, %s963_s15, %s964_s16  }
 0x259   :  { %960 = dma.done.wait [#allocation3], 256  }
 0x25a   :  { %961 = vsyncadd [#allocation3], 4294967040 }
 0x25b   :  { %564 = vsyncpa [#allocation3], 1 }

</bundles_post_ra>
